<compile_context>
chip_gen: v5e
topology: v5e:2x2
jax: 0.10.0
libtpu: 0.0.40
codegen_flags: <defaults>
</compile_context>

<pallas_src>
import functools
import math

import jax
import jax.numpy as jnp
from jax.experimental import pallas as pl
from jax.experimental.pallas import tpu as pltpu

SIGMA_0 = 0.5


def _round_up(x, m):
    return (x + m - 1) // m * m


# ----------------------------------------------------------------------------
# Pallas kernel
# ----------------------------------------------------------------------------
def _noisy_linear_kernel(x_ref, w_ref, ws_ref, weps_ref,
                         b_ref, bs_ref, beps_ref, o_ref, acc_ref):
    """One (bm, bn) output tile, accumulated over the K grid axis.

    x_ref    : (bm, bk)  activations
    w_ref    : (bn, bk)  weight        -- PyTorch (out, in) layout, no transpose
    ws_ref   : (bn, bk)  weight_sigma
    weps_ref : (bn, bk)  weight_eps
    b_ref    : (1, bn)   bias
    bs_ref   : (1, bn)   bias_sigma
    beps_ref : (1, bn)   bias_eps
    o_ref    : (bm, bn)  output tile
    acc_ref  : (bm, bn)  f32 accumulator scratch (resident across K steps)
    """
    k = pl.program_id(2)

    @pl.when(k == 0)
    def _():
        acc_ref[...] = jnp.zeros_like(acc_ref)

    # Fuse the noise into the weight tile in VMEM; W_eff never touches HBM.
    w_eff = w_ref[...] + ws_ref[...] * weps_ref[...]            # (bn, bk)

    # Contract K against the (out, in) layout directly: x @ W_eff^T on the MXU.
    acc_ref[...] += jax.lax.dot_general(
        x_ref[...], w_eff,
        dimension_numbers=(((1,), (1,)), ((), ())),
        preferred_element_type=jnp.float32)

    @pl.when(k == pl.num_programs(2) - 1)
    def _():
        b_eff = b_ref[...] + bs_ref[...] * beps_ref[...]        # (1, bn)
        o_ref[...] = (acc_ref[...] + b_eff).astype(o_ref.dtype)


# ----------------------------------------------------------------------------
# Wrapper
# ----------------------------------------------------------------------------
def noisy_linear(x, weight, weight_sigma, bias, bias_sigma,
                 weight_eps, bias_eps, *, bm=256, bn=256, bk=512):
    """y = x @ (weight + weight_sigma*weight_eps)^T + (bias + bias_sigma*bias_eps).

    x:(M,K)  weight/weight_sigma/weight_eps:(N,K)  bias/bias_sigma/bias_eps:(N,)
    """
    M, K = x.shape
    N, K2 = weight.shape
    assert K == K2, (K, K2)

    # Clamp tile sizes to the (padded) problem size; keep (8, 128) alignment.
    bm = min(bm, _round_up(M, 8))
    bn = min(bn, _round_up(N, 128))
    bk = min(bk, _round_up(K, 128))

    Mp, Np, Kp = _round_up(M, bm), _round_up(N, bn), _round_up(K, bk)

    def pad2(a, r, c):
        return jnp.pad(a, ((0, r - a.shape[0]), (0, c - a.shape[1])))

    def pad_vec(v):
        return jnp.pad(v, (0, Np - N)).reshape(1, Np)

    xp = pad2(x, Mp, Kp)
    wp = pad2(weight, Np, Kp)
    wsp = pad2(weight_sigma, Np, Kp)
    wepsp = pad2(weight_eps, Np, Kp)
    bp, bsp, bepsp = pad_vec(bias), pad_vec(bias_sigma), pad_vec(bias_eps)

    grid = (Mp // bm, Np // bn, Kp // bk)

    x_spec = pl.BlockSpec((bm, bk), lambda i, j, k: (i, k))
    w_spec = pl.BlockSpec((bn, bk), lambda i, j, k: (j, k))
    vec_spec = pl.BlockSpec((1, bn), lambda i, j, k: (0, j))
    out_spec = pl.BlockSpec((bm, bn), lambda i, j, k: (i, j))

    out = pl.pallas_call(
        _noisy_linear_kernel,
        out_shape=jax.ShapeDtypeStruct((Mp, Np), x.dtype),
        grid_spec=pltpu.PrefetchScalarGridSpec(
            num_scalar_prefetch=0,
            grid=grid,
            in_specs=[x_spec, w_spec, w_spec, w_spec,
                      vec_spec, vec_spec, vec_spec],
            out_specs=out_spec,
            scratch_shapes=[pltpu.VMEM((bm, bn), jnp.float32)],
        ),
        compiler_params=pltpu.CompilerParams(
            dimension_semantics=("parallel", "parallel", "arbitrary")),
    )(xp, wp, wsp, wepsp, bp, bsp, bepsp)

    return out[:M, :N]


# ----------------------------------------------------------------------------
# Parameter init (mirrors noisy_linear.reset_parameters)
# ----------------------------------------------------------------------------
def init_noisy_linear(key, in_features, out_features, sigma_0):
    kw, kb = jax.random.split(key)
    stdv = 1.0 / math.sqrt(in_features)
    return dict(
        weight=jax.random.uniform(
            kw, (out_features, in_features), jnp.float32, -stdv, stdv),
        weight_sigma=jnp.full(
            (out_features, in_features), sigma_0 * stdv, jnp.float32),
        bias=jax.random.uniform(kb, (out_features,), jnp.float32, -stdv, stdv),
        bias_sigma=jnp.full((out_features,), sigma_0 * stdv, jnp.float32),
    )


# ----------------------------------------------------------------------------
if __name__ == "__main__":
    batch, in_features, out_features = 2, 384, 192

    key = jax.random.PRNGKey(0)
    kp, kx, kfi, kfo = jax.random.split(key, 4)
    params = init_noisy_linear(kp, in_features, out_features, SIGMA_0)
    x = jax.random.normal(kx, (batch, in_features), jnp.float32)

    # Factored Gaussian noise, as Rainbow's reset_noise() would produce
    # (the kernel accepts any eps; this is just a deterministic example).
    f_in = jax.random.normal(kfi, (in_features,), jnp.float32)
    f_out = jax.random.normal(kfo, (out_features,), jnp.float32)
    f_in = jnp.sign(f_in) * jnp.sqrt(jnp.abs(f_in))
    f_out = jnp.sign(f_out) * jnp.sqrt(jnp.abs(f_out))
    weight_eps = jnp.outer(f_out, f_in)
    bias_eps = f_out

    args = (x, params["weight"], params["weight_sigma"],
            params["bias"], params["bias_sigma"], weight_eps, bias_eps)

    # Small tiles -> grid (1, 2, 3): exercises the K accumulation loop and the
    # parallel N tiling.  Default tiles collapse to a single block here.
    fwd_tiled = jax.jit(functools.partial(noisy_linear, bm=128, bn=128, bk=128))
    fwd_default = jax.jit(noisy_linear)

    y_tiled = jax.block_until_ready(fwd_tiled(*args))
    y_default = jax.block_until_ready(fwd_default(*args))

    # Pure-JAX f32 reference.
    w_eff = params["weight"] + params["weight_sigma"] * weight_eps
    b_eff = params["bias"] + params["bias_sigma"] * bias_eps
    y_ref = jax.lax.dot_general(
        x, w_eff, (((1,), (1,)), ((), ())),
        precision=jax.lax.Precision.HIGHEST) + b_eff

    assert y_tiled.shape == (batch, out_features)
    assert bool(jnp.all(jnp.isfinite(y_tiled)))
    assert bool(jnp.allclose(y_tiled, y_ref, atol=2e-3, rtol=2e-3))
    assert bool(jnp.allclose(y_default, y_ref, atol=2e-3, rtol=2e-3))
    print("KERNEL_OK")
</pallas_src>

<mosaic_0001>
module attributes {stable_mosaic.version = 11 : i64} {
  func.func @_noisy_linear_kernel(%arg0: i32, %arg1: i32, %arg2: i32, %arg3: memref<8x128xf32, #tpu.memory_space<vmem>>, %arg4: memref<128x128xf32, #tpu.memory_space<vmem>>, %arg5: memref<128x128xf32, #tpu.memory_space<vmem>>, %arg6: memref<128x128xf32, #tpu.memory_space<vmem>>, %arg7: memref<1x128xf32, #tpu.memory_space<vmem>>, %arg8: memref<1x128xf32, #tpu.memory_space<vmem>>, %arg9: memref<1x128xf32, #tpu.memory_space<vmem>>, %arg10: memref<8x128xf32, #tpu.memory_space<vmem>>, %arg11: memref<8x128xf32, #tpu.memory_space<vmem>>) attributes {dimension_semantics = [#tpu.dimension_semantics<parallel>, #tpu.dimension_semantics<parallel>, #tpu.dimension_semantics<arbitrary>], iteration_bounds = array<i64: 1, 2, 3>, scalar_prefetch = 0 : i64, scratch_operands = 1 : i64, tpu.core_type = #tpu.core_type<tc>, window_params = [{transform_indices = @transform_0, window_bounds = array<i64: 8, 128>}, {transform_indices = @transform_1, window_bounds = array<i64: 128, 128>}, {transform_indices = @transform_2, window_bounds = array<i64: 128, 128>}, {transform_indices = @transform_3, window_bounds = array<i64: 128, 128>}, {transform_indices = @transform_4, window_bounds = array<i64: 1, 128>}, {transform_indices = @transform_5, window_bounds = array<i64: 1, 128>}, {transform_indices = @transform_6, window_bounds = array<i64: 1, 128>}, {transform_indices = @transform_7, window_bounds = array<i64: 8, 128>}]} {
    %c0_i32 = arith.constant 0 : i32
    %0 = arith.cmpi eq, %arg2, %c0_i32 : i32
    %1 = arith.extui %0 : i1 to i32
    %c0_i32_0 = arith.constant 0 : i32
    %2 = arith.cmpi ne, %1, %c0_i32_0 : i32
    scf.if %2 {
      %cst_13 = arith.constant 0.000000e+00 : f32
      %16 = vector.broadcast %cst_13 : f32 to vector<8x128xf32>
      %c0_14 = arith.constant 0 : index
      %c0_15 = arith.constant 0 : index
      %17 = vector.load %arg11[%c0_14, %c0_15] : memref<8x128xf32, #tpu.memory_space<vmem>>, vector<8x128xf32>
      tpu.vector_store %arg11[%c0_14, %c0_15], %16 {strides = array<i32>} : memref<8x128xf32, #tpu.memory_space<vmem>>, vector<8x128xf32>,
    } else {
    }
    %c0 = arith.constant 0 : index
    %c0_1 = arith.constant 0 : index
    %3 = vector.load %arg4[%c0, %c0_1] : memref<128x128xf32, #tpu.memory_space<vmem>>, vector<128x128xf32>
    %c0_2 = arith.constant 0 : index
    %c0_3 = arith.constant 0 : index
    %4 = vector.load %arg5[%c0_2, %c0_3] : memref<128x128xf32, #tpu.memory_space<vmem>>, vector<128x128xf32>
    %c0_4 = arith.constant 0 : index
    %c0_5 = arith.constant 0 : index
    %5 = vector.load %arg6[%c0_4, %c0_5] : memref<128x128xf32, #tpu.memory_space<vmem>>, vector<128x128xf32>
    %6 = arith.mulf %4, %5 : vector<128x128xf32>
    %7 = arith.addf %3, %6 : vector<128x128xf32>
    %c0_6 = arith.constant 0 : index
    %c0_7 = arith.constant 0 : index
    %8 = vector.load %arg11[%c0_6, %c0_7] : memref<8x128xf32, #tpu.memory_space<vmem>>, vector<8x128xf32>
    %c0_8 = arith.constant 0 : index
    %c0_9 = arith.constant 0 : index
    %9 = vector.load %arg3[%c0_8, %c0_9] : memref<8x128xf32, #tpu.memory_space<vmem>>, vector<8x128xf32>
    %cst = arith.constant dense<0.000000e+00> : vector<8x128xf32>
    %10 = tpu.matmul %9, %7, %cst {dimension_numbers = #tpu.dot_dimension_numbers<[1], [1], [0], [0], [0, 0, 1, 0], [], []>} : vector<8x128xf32>, vector<128x128xf32>, vector<8x128xf32> -> vector<8x128xf32>
    %11 = arith.addf %8, %10 : vector<8x128xf32>
    %c0_10 = arith.constant 0 : index
    %c0_11 = arith.constant 0 : index
    %12 = vector.load %arg11[%c0_10, %c0_11] : memref<8x128xf32, #tpu.memory_space<vmem>>, vector<8x128xf32>
    tpu.vector_store %arg11[%c0_10, %c0_11], %11 {strides = array<i32>} : memref<8x128xf32, #tpu.memory_space<vmem>>, vector<8x128xf32>,
    %c2_i32 = arith.constant 2 : i32
    %13 = arith.cmpi eq, %arg2, %c2_i32 : i32
    %14 = arith.extui %13 : i1 to i32
    %c0_i32_12 = arith.constant 0 : i32
    %15 = arith.cmpi ne, %14, %c0_i32_12 : i32
    scf.if %15 {
      %c0_13 = arith.constant 0 : index
      %c0_14 = arith.constant 0 : index
      %16 = vector.load %arg7[%c0_13, %c0_14] : memref<1x128xf32, #tpu.memory_space<vmem>>, vector<1x128xf32>
      %c0_15 = arith.constant 0 : index
      %c0_16 = arith.constant 0 : index
      %17 = vector.load %arg8[%c0_15, %c0_16] : memref<1x128xf32, #tpu.memory_space<vmem>>, vector<1x128xf32>
      %c0_17 = arith.constant 0 : index
      %c0_18 = arith.constant 0 : index
      %18 = vector.load %arg9[%c0_17, %c0_18] : memref<1x128xf32, #tpu.memory_space<vmem>>, vector<1x128xf32>
      %19 = arith.mulf %17, %18 : vector<1x128xf32>
      %20 = arith.addf %16, %19 : vector<1x128xf32>
      %c0_19 = arith.constant 0 : index
      %c0_20 = arith.constant 0 : index
      %21 = vector.load %arg11[%c0_19, %c0_20] : memref<8x128xf32, #tpu.memory_space<vmem>>, vector<8x128xf32>
      %22 = vector.broadcast %20 : vector<1x128xf32> to vector<8x128xf32>
      %23 = arith.addf %21, %22 : vector<8x128xf32>
      %c0_21 = arith.constant 0 : index
      %c0_22 = arith.constant 0 : index
      %24 = vector.load %arg10[%c0_21, %c0_22] : memref<8x128xf32, #tpu.memory_space<vmem>>, vector<8x128xf32>
      tpu.vector_store %arg10[%c0_21, %c0_22], %23 {strides = array<i32>} : memref<8x128xf32, #tpu.memory_space<vmem>>, vector<8x128xf32>,
    } else {
    }
    return
  }
  func.func @transform_0(%arg0: i32, %arg1: i32, %arg2: i32) -> (i32, i32) {
    %c0_i32 = arith.constant 0 : i32
    return %arg0, %arg2 : i32, i32
  }
  func.func @transform_1(%arg0: i32, %arg1: i32, %arg2: i32) -> (i32, i32) {
    %c0_i32 = arith.constant 0 : i32
    return %arg1, %arg2 : i32, i32
  }
  func.func @transform_2(%arg0: i32, %arg1: i32, %arg2: i32) -> (i32, i32) {
    %c0_i32 = arith.constant 0 : i32
    return %arg1, %arg2 : i32, i32
  }
  func.func @transform_3(%arg0: i32, %arg1: i32, %arg2: i32) -> (i32, i32) {
    %c0_i32 = arith.constant 0 : i32
    return %arg1, %arg2 : i32, i32
  }
  func.func @transform_4(%arg0: i32, %arg1: i32, %arg2: i32) -> (i32, i32) {
    %c0_i32 = arith.constant 0 : i32
    %c0_i32_0 = arith.constant 0 : i32
    return %c0_i32, %arg1 : i32, i32
  }
  func.func @transform_5(%arg0: i32, %arg1: i32, %arg2: i32) -> (i32, i32) {
    %c0_i32 = arith.constant 0 : i32
    %c0_i32_0 = arith.constant 0 : i32
    return %c0_i32, %arg1 : i32, i32
  }
  func.func @transform_6(%arg0: i32, %arg1: i32, %arg2: i32) -> (i32, i32) {
    %c0_i32 = arith.constant 0 : i32
    %c0_i32_0 = arith.constant 0 : i32
    return %c0_i32, %arg1 : i32, i32
  }
  func.func @transform_7(%arg0: i32, %arg1: i32, %arg2: i32) -> (i32, i32) {
    %c0_i32 = arith.constant 0 : i32
    return %arg0, %arg1 : i32, i32
  }
}

</mosaic_0001>

<bundles_post_ra>
// kernel: noisy_linear.1
= control target key start
LH: loop header
LB: loop body
LE: loop exit
PB: predicated region body
PF: predicated region fallthrough
CT: control target
= control target key end

     0   :  { %s1467_s0 = inlined_call_operand.vmem [shape: f32[8,384], index: 0, kind: input, shape index: {}]   ;;  %s1468_s1 = inlined_call_operand.vmem [shape: f32[256,384], index: 1, kind: input, shape index: {}]   ;;  %s1469_s2 = inlined_call_operand.vmem [shape: f32[256,384], index: 2, kind: input, shape index: {}]   ;;  %s1470_s3 = inlined_call_operand.vmem [shape: f32[256,384], index: 3, kind: input, shape index: {}]   ;;  %s1471_s4 = inlined_call_operand.vmem [shape: f32[1,256], index: 4, kind: input, shape index: {}]   ;;  %s1472_s5 = inlined_call_operand.vmem [shape: f32[1,256], index: 5, kind: input, shape index: {}]   ;;  %s1473_s6 = inlined_call_operand.vmem [shape: f32[1,256], index: 6, kind: input, shape index: {}]   ;;  %s1474_s7 = inlined_call_operand.vmem [shape: f32[8,256], index: 7, kind: output, shape index: {}]  }
   0x1   :  { %1476 = sst [smem:[#allocation7_spill]] %s1468_s1 }
   0x2   :  { %1477 = sst [smem:[#allocation8_spill]] %s1469_s2 }
   0x3   :  { %1478 = sst [smem:[#allocation9_spill]] %s1470_s3 }
   0x4   :  { %s1205_s24 = smov 0   ;;  %s1207_s25 = smov 0  }
   0x5   :  { %s1209_s26 = smov 0   ;;  %s1211_s27 = smov 0  }
   0x6   :  { %s1213_s28 = smov 0   ;;  %s1215_s29 = smov 0  }
   0x7   :  { %s1217_s30 = smov 0  }
   0x8 LB: > { %s29_s8 = sadd.s32 1, %s1154_s28  ;;  %s32_s9 = sadd.s32 1, %s1158_s29  ;;  %s1162_s30 = sphi %s1217_s30, %s17_s30   ;;  %s1158_s29 = sphi %s1215_s29, %s1490_s29   ;;  %s1154_s28 = sphi %s1213_s28, %s1489_s28   ;;  %s1150_s27 = sphi %s1211_s27, %s1488_s27   ;;  %s1146_s26 = sphi %s1209_s26, %s1487_s26   ;;  %s1142_s25 = sphi %s1207_s25, %s1486_s25   ;;  %s1138_s24 = sphi %s1205_s24, %s1485_s24  }
   0x9   : > { %p30_p0 = scmp.ge.s32.totalorder %s29_s8, 3  ;;  %p80_p1 = scmp.ne.s32.totalorder %s1142_s25, %s1138_s24 }
   0xa   : > { %p81_p2 = scmp.eq.s32.totalorder %s1162_s30, 0  ;;  %s73_s14 = sadd.s32 1, %s1142_s25 }
   0xb   : > { %s1492_s8 = smov (%p30_p0, %s29_s8), 0  ;;  %s1494_s9 = smov (!%p30_p0, %s32_s9), %s1158_s29 }
   0xc   : > { %p1248_p3 = por %p81_p2, %p80_p1  ;;  %p34_p4 = scmp.ge.s32.totalorder %s1494_s9, 2 }
   0xd   : > { %s69_s11 = ssub.s32 %s1154_s28, %s1492_s8  ;;  %p1025_p6 = scmp.ge.s32.totalorder %s1162_s30, 6 }
   0xe   : > { %s1496_s9 = smov (%p34_p4, %s1494_s9), 0 }
   0xf   : > { %1480 = sst [smem:[#allocation6_spill]] %s1496_s9  ;;  %s68_s12 = ssub.s32 %s1158_s29, %s1496_s9 }
  0x10   : > { %s70_s13 = sor.u32 %s69_s11, %s68_s12  ;;  %268 = sbr.rel (%p1025_p6) target bundleno = 99 (0x63), region = 16 }
  0x11   : > { %p71_p5 = scmp.eq.s32.totalorder %s70_s13, 0 }
  0x13   : > { %s1260_s15 = scalar_select %p71_p5, %s1142_s25, %s73_s14  }
  0x15   : > { %282 = sbr.rel (!%p1248_p3) target bundleno = 47 (0x2f), region = 24  ;;  %s284_s16 = sand.u32 (%p1248_p3), 1, %s1142_s25  }
  0x16   : > { %s1048_s17 = smul.u32 (%p1248_p3), 48, %s1158_s29  ;;  %s1026_s18 = sshll.u32 (%p1248_p3), %s284_s16, 7 }
  0x17   : > { %s1481_s1 = sld [smem:[#allocation7_spill]] (%p1248_p3)  ;;  %s286_s11 = scalar_lea.vmem (%p1248_p3), [#allocation3], %s1026_s18 }
  0x18   : > { %s289_s19 = sadd.s32 (%p1248_p3), %s1154_s28, %s1048_s17 }
  0x19   : > { %s1029_s20 = sshll.u32 (%p1248_p3), %s289_s19, 3 }
  0x1d   : > { %s1271_s23 = scalar_lea.vmem %s1481_s1, %s1029_s20 }
  0x1e   : > { %v350_v0 = vld [vmem:[%s1271_s23] sm:$0xff]  ;;  %v352_v1 = vld [vmem:[%s1271_s23 + $0x18] sm:$0xff]  ;;  %v354_v2 = vld [vmem:[%s1271_s23 + $0x30] sm:$0xff] }
  0x1f   : > { %351 = vst [vmem:[%s286_s11] sm:$0xff] %v350_v0  ;;  %v356_v3 = vld [vmem:[%s1271_s23 + $0x48] sm:$0xff]  ;;  %v358_v4 = vld [vmem:[%s1271_s23 + $0x60] sm:$0xff]  ;;  %v360_v5 = vld [vmem:[%s1271_s23 + $0x78] sm:$0xff] }
  0x20   : > { %353 = vst [vmem:[%s286_s11 + $0x8] sm:$0xff] %v352_v1  ;;  %v362_v6 = vld [vmem:[%s1271_s23 + $0x90] sm:$0xff]  ;;  %v364_v7 = vld [vmem:[%s1271_s23 + $0xa8] sm:$0xff]  ;;  %v366_v8 = vld [vmem:[%s1271_s23 + $0xc0] sm:$0xff] }
  0x21   : > { %355 = vst [vmem:[%s286_s11 + $0x10] sm:$0xff] %v354_v2  ;;  %v368_v9 = vld [vmem:[%s1271_s23 + $0xd8] sm:$0xff]  ;;  %v370_v10 = vld [vmem:[%s1271_s23 + $0xf0] sm:$0xff]  ;;  %v372_v11 = vld [vmem:[%s1271_s23 + $0x108] sm:$0xff] }
  0x22   : > { %357 = vst [vmem:[%s286_s11 + $0x18] sm:$0xff] %v356_v3  ;;  %v374_v12 = vld [vmem:[%s1271_s23 + $0x120] sm:$0xff]  ;;  %v376_v13 = vld [vmem:[%s1271_s23 + $0x138] sm:$0xff]  ;;  %v378_v14 = vld [vmem:[%s1271_s23 + $0x150] sm:$0xff] }
  0x23   : > { %359 = vst [vmem:[%s286_s11 + $0x20] sm:$0xff] %v358_v4  ;;  %v380_v15 = vld [vmem:[%s1271_s23 + $0x168] sm:$0xff] }
  0x24   : > { %361 = vst [vmem:[%s286_s11 + $0x28] sm:$0xff] %v360_v5 }
  0x25   : > { %363 = vst [vmem:[%s286_s11 + $0x30] sm:$0xff] %v362_v6 }
  0x26   : > { %365 = vst [vmem:[%s286_s11 + $0x38] sm:$0xff] %v364_v7 }
  0x27   : > { %367 = vst [vmem:[%s286_s11 + $0x40] sm:$0xff] %v366_v8 }
  0x28   : > { %369 = vst [vmem:[%s286_s11 + $0x48] sm:$0xff] %v368_v9 }
  0x29   : > { %371 = vst [vmem:[%s286_s11 + $0x50] sm:$0xff] %v370_v10 }
  0x2a   : > { %373 = vst [vmem:[%s286_s11 + $0x58] sm:$0xff] %v372_v11 }
  0x2b   : > { %375 = vst [vmem:[%s286_s11 + $0x60] sm:$0xff] %v374_v12 }
  0x2c   : > { %377 = vst [vmem:[%s286_s11 + $0x68] sm:$0xff] %v376_v13 }
  0x2d   : > { %379 = vst [vmem:[%s286_s11 + $0x70] sm:$0xff] %v378_v14 }
  0x2e   : > { %381 = vst [vmem:[%s286_s11 + $0x78] sm:$0xff] %v380_v15 }
  0x2f PF: > { %387 = sbr.rel (!%p1248_p3) target bundleno = 73 (0x49), region = 62  ;;  %s389_s12 = sand.u32 (%p1248_p3), 1, %s1142_s25  }
  0x30   : > { %s1049_s13 = smul.u32 (%p1248_p3), 48, %s1158_s29  ;;  %s1030_s14 = sshll.u32 (%p1248_p3), %s389_s12, 7 }
  0x31   : > { %s1482_s2 = sld [smem:[#allocation8_spill]] (%p1248_p3)  ;;  %s391_s21 = scalar_lea.vmem (%p1248_p3), [#allocation4], %s1030_s14 }
  0x32   : > { %s394_s16 = sadd.s32 (%p1248_p3), %s1154_s28, %s1049_s13 }
  0x33   : > { %s1033_s17 = sshll.u32 (%p1248_p3), %s394_s16, 3 }
  0x37   : > { %s1297_s20 = scalar_lea.vmem %s1482_s2, %s1033_s17 }
  0x38   : > { %v455_v16 = vld [vmem:[%s1297_s20] sm:$0xff]  ;;  %v457_v17 = vld [vmem:[%s1297_s20 + $0x18] sm:$0xff]  ;;  %v459_v18 = vld [vmem:[%s1297_s20 + $0x30] sm:$0xff] }
  0x39   : > { %456 = vst [vmem:[%s391_s21] sm:$0xff] %v455_v16  ;;  %v461_v19 = vld [vmem:[%s1297_s20 + $0x48] sm:$0xff]  ;;  %v463_v20 = vld [vmem:[%s1297_s20 + $0x60] sm:$0xff]  ;;  %v465_v21 = vld [vmem:[%s1297_s20 + $0x78] sm:$0xff] }
  0x3a   : > { %458 = vst [vmem:[%s391_s21 + $0x8] sm:$0xff] %v457_v17  ;;  %v467_v22 = vld [vmem:[%s1297_s20 + $0x90] sm:$0xff]  ;;  %v469_v23 = vld [vmem:[%s1297_s20 + $0xa8] sm:$0xff]  ;;  %v471_v24 = vld [vmem:[%s1297_s20 + $0xc0] sm:$0xff] }
  0x3b   : > { %460 = vst [vmem:[%s391_s21 + $0x10] sm:$0xff] %v459_v18  ;;  %v473_v25 = vld [vmem:[%s1297_s20 + $0xd8] sm:$0xff]  ;;  %v475_v26 = vld [vmem:[%s1297_s20 + $0xf0] sm:$0xff]  ;;  %v477_v27 = vld [vmem:[%s1297_s20 + $0x108] sm:$0xff] }
  0x3c   : > { %462 = vst [vmem:[%s391_s21 + $0x18] sm:$0xff] %v461_v19  ;;  %v479_v28 = vld [vmem:[%s1297_s20 + $0x120] sm:$0xff]  ;;  %v481_v29 = vld [vmem:[%s1297_s20 + $0x138] sm:$0xff]  ;;  %v483_v30 = vld [vmem:[%s1297_s20 + $0x150] sm:$0xff] }
  0x3d   : > { %464 = vst [vmem:[%s391_s21 + $0x20] sm:$0xff] %v463_v20  ;;  %v485_v31 = vld [vmem:[%s1297_s20 + $0x168] sm:$0xff] }
  0x3e   : > { %466 = vst [vmem:[%s391_s21 + $0x28] sm:$0xff] %v465_v21 }
  0x3f   : > { %468 = vst [vmem:[%s391_s21 + $0x30] sm:$0xff] %v467_v22 }
  0x40   : > { %470 = vst [vmem:[%s391_s21 + $0x38] sm:$0xff] %v469_v23 }
  0x41   : > { %472 = vst [vmem:[%s391_s21 + $0x40] sm:$0xff] %v471_v24 }
  0x42   : > { %474 = vst [vmem:[%s391_s21 + $0x48] sm:$0xff] %v473_v25 }
  0x43   : > { %476 = vst [vmem:[%s391_s21 + $0x50] sm:$0xff] %v475_v26 }
  0x44   : > { %478 = vst [vmem:[%s391_s21 + $0x58] sm:$0xff] %v477_v27 }
  0x45   : > { %480 = vst [vmem:[%s391_s21 + $0x60] sm:$0xff] %v479_v28 }
  0x46   : > { %482 = vst [vmem:[%s391_s21 + $0x68] sm:$0xff] %v481_v29 }
  0x47   : > { %484 = vst [vmem:[%s391_s21 + $0x70] sm:$0xff] %v483_v30 }
  0x48   : > { %486 = vst [vmem:[%s391_s21 + $0x78] sm:$0xff] %v485_v31 }
  0x49 PF: > { %492 = sbr.rel (!%p1248_p3) target bundleno = 99 (0x63), region = 100  ;;  %s494_s22 = sand.u32 (%p1248_p3), 1, %s1142_s25  }
  0x4a   : > { %s1050_s23 = smul.u32 (%p1248_p3), 48, %s1158_s29  ;;  %s1034_s11 = sshll.u32 (%p1248_p3), %s494_s22, 7 }
  0x4b   : > { %s1483_s3 = sld [smem:[#allocation9_spill]] (%p1248_p3)  ;;  %s496_s10 = scalar_lea.vmem (%p1248_p3), [#allocation5], %s1034_s11 }
  0x4c   : > { %s499_s12 = sadd.s32 (%p1248_p3), %s1154_s28, %s1050_s23 }
  0x4d   : > { %s1037_s13 = sshll.u32 (%p1248_p3), %s499_s12, 3 }
  0x51   : > { %s1323_s17 = scalar_lea.vmem %s1483_s3, %s1037_s13 }
  0x52   : > { %v560_v32 = vld [vmem:[%s1323_s17] sm:$0xff]  ;;  %v562_v33 = vld [vmem:[%s1323_s17 + $0x18] sm:$0xff]  ;;  %v564_v34 = vld [vmem:[%s1323_s17 + $0x30] sm:$0xff] }
  0x53   : > { %561 = vst [vmem:[%s496_s10] sm:$0xff] %v560_v32  ;;  %v566_v35 = vld [vmem:[%s1323_s17 + $0x48] sm:$0xff]  ;;  %v568_v36 = vld [vmem:[%s1323_s17 + $0x60] sm:$0xff]  ;;  %v570_v37 = vld [vmem:[%s1323_s17 + $0x78] sm:$0xff] }
  0x54   : > { %563 = vst [vmem:[%s496_s10 + $0x8] sm:$0xff] %v562_v33  ;;  %v572_v38 = vld [vmem:[%s1323_s17 + $0x90] sm:$0xff]  ;;  %v574_v39 = vld [vmem:[%s1323_s17 + $0xa8] sm:$0xff]  ;;  %v576_v40 = vld [vmem:[%s1323_s17 + $0xc0] sm:$0xff] }
  0x55   : > { %565 = vst [vmem:[%s496_s10 + $0x10] sm:$0xff] %v564_v34  ;;  %v578_v41 = vld [vmem:[%s1323_s17 + $0xd8] sm:$0xff]  ;;  %v580_v42 = vld [vmem:[%s1323_s17 + $0xf0] sm:$0xff]  ;;  %v582_v43 = vld [vmem:[%s1323_s17 + $0x108] sm:$0xff] }
  0x56   : > { %567 = vst [vmem:[%s496_s10 + $0x18] sm:$0xff] %v566_v35  ;;  %v584_v44 = vld [vmem:[%s1323_s17 + $0x120] sm:$0xff]  ;;  %v586_v45 = vld [vmem:[%s1323_s17 + $0x138] sm:$0xff]  ;;  %v588_v46 = vld [vmem:[%s1323_s17 + $0x150] sm:$0xff] }
  0x57   : > { %569 = vst [vmem:[%s496_s10 + $0x20] sm:$0xff] %v568_v36  ;;  %v590_v47 = vld [vmem:[%s1323_s17 + $0x168] sm:$0xff] }
  0x58   : > { %571 = vst [vmem:[%s496_s10 + $0x28] sm:$0xff] %v570_v37 }
  0x59   : > { %573 = vst [vmem:[%s496_s10 + $0x30] sm:$0xff] %v572_v38 }
  0x5a   : > { %575 = vst [vmem:[%s496_s10 + $0x38] sm:$0xff] %v574_v39 }
  0x5b   : > { %577 = vst [vmem:[%s496_s10 + $0x40] sm:$0xff] %v576_v40 }
  0x5c   : > { %579 = vst [vmem:[%s496_s10 + $0x48] sm:$0xff] %v578_v41 }
  0x5d   : > { %581 = vst [vmem:[%s496_s10 + $0x50] sm:$0xff] %v580_v42 }
  0x5e   : > { %583 = vst [vmem:[%s496_s10 + $0x58] sm:$0xff] %v582_v43 }
  0x5f   : > { %585 = vst [vmem:[%s496_s10 + $0x60] sm:$0xff] %v584_v44 }
  0x60   : > { %587 = vst [vmem:[%s496_s10 + $0x68] sm:$0xff] %v586_v45 }
  0x61   : > { %589 = vst [vmem:[%s496_s10 + $0x70] sm:$0xff] %v588_v46 }
  0x62   : > { %591 = vst [vmem:[%s496_s10 + $0x78] sm:$0xff] %v590_v47 }
  0x63 PF: > { %p1038_p7 = scmp.ge.s32.totalorder %s1162_s30, 1  ;;  %p614_p8 = scmp.lt.s32.totalorder %s1162_s30, 7 }
  0x65   : > { %p615_p9 = pnand %p1038_p7, %p614_p8 }
  0x66   : > { %s621_s18 = sand.u32 (!%p615_p9), 1, %s1138_s24   ;;  %p696_p10 = scmp.lt.s32.totalorder (!%p615_p9), %s1146_s26, 2 }
  0x67   : > { %618 = sbr.rel (%p615_p9) target bundleno = 327 (0x147), region = 150  ;;  %s1039_s19 = sshll.u32 (!%p615_p9), %s621_s18, 7 }
  0x68   : > { %p705_p11 = scmp.lt.s32.totalorder (!%p615_p9), %s1150_s27, 1  ;;  %s1375_s22 = scalar_lea.vmem (!%p615_p9), [#allocation4], %s1039_s19 }
  0x69   : > { %s1377_s23 = scalar_lea.vmem (!%p615_p9), [#allocation5], %s1039_s19  ;;  %p1044_p12 = scmp.ne.s32.totalorder (!%p615_p9), %s1146_s26, 0 }
  0x6c   : > { %s697_s20 = scalar_select %p696_p10, %s1146_s26, 2 }
  0x6d   : > { %s1498_s27 = smov (!%p705_p11, %s1150_s27), 1  ;;  %725 = sbr.rel (%p1044_p12) target bundleno = 116 (0x74), region = 166 }
  0x6e   : > { %s1042_s21 = sshll.u32 %s697_s20, 3  ;;  %s707_s24 = scalar_lea.vmem %s1471_s4, %s1498_s27 }
  0x6f   : > { %s1353_s11 = scalar_lea.vmem %s1467_s0, %s1042_s21  ;;  %s710_s17 = scalar_lea.vmem %s1472_s5, %s1498_s27 }
  0x70   : > { %s713_s1 = scalar_lea.vmem %s1473_s6, %s1498_s27  ;;  %s1043_s2 = sshll.u32 %s1498_s27, 3 }
  0x71   : > { %s1371_s9 = scalar_lea.vmem %s1474_s7, %s1043_s2  ;;  %s1373_s21 = scalar_lea.vmem [#allocation3], %s1039_s19 }
  0x72   : > { %v1164_v48 = vmov 0.0  }
  0x73   : > { %726 = vst [vmem:[#allocation2] sm:$0xff] %v1164_v48 }
  0x74 PF: > { %v742_v49 = vld [vmem:[%s1373_s21 + $0x78] sm:$0xff]  ;;  %v757_v53 = vld [vmem:[%s1375_s22 + $0x70] sm:$0xff]  ;;  %v756_v57 = vld [vmem:[%s1375_s22 + $0x68] sm:$0xff]  ;;  %p1045_p13 = scmp.ne.s32.totalorder %s1146_s26, 2 }
  0x75   : > { %v758_v50 = vld [vmem:[%s1375_s22 + $0x78] sm:$0xff]  ;;  %v773_v54 = vld [vmem:[%s1377_s23 + $0x70] sm:$0xff]  ;;  %v772_v58 = vld [vmem:[%s1377_s23 + $0x68] sm:$0xff] }
  0x76   : > { %v774_v51 = vld [vmem:[%s1377_s23 + $0x78] sm:$0xff]  ;;  %v741_v55 = vld [vmem:[%s1373_s21 + $0x70] sm:$0xff]  ;;  %v789_v56 = vmul.f32 %v773_v54, %v757_v53  ;;  %v788_v61 = vmul.f32 %v772_v58, %v756_v57  ;;  %v740_v62 = vld [vmem:[%s1373_s21 + $0x68] sm:$0xff] }
  0x77   : > { %v790_v52 = vmul.f32 %v774_v51, %v758_v50  ;;  %v755_v63 = vld [vmem:[%s1375_s22 + $0x60] sm:$0xff]  ;;  %v754_v4 = vld [vmem:[%s1375_s22 + $0x58] sm:$0xff]  ;;  %v753_v9 = vld [vmem:[%s1375_s22 + $0x50] sm:$0xff] }
  0x78   : > { %v805_v60 = vadd.f32 %v789_v56, %v741_v55  ;;  %v771_v0 = vld [vmem:[%s1377_s23 + $0x60] sm:$0xff]  ;;  %v804_v1 = vadd.f32 %v788_v61, %v740_v62  ;;  %v770_v5 = vld [vmem:[%s1377_s23 + $0x58] sm:$0xff]  ;;  %v769_v10 = vld [vmem:[%s1377_s23 + $0x50] sm:$0xff] }
  0x79   : > { %v806_v59 = vadd.f32 %v790_v52, %v742_v49  ;;  %v787_v2 = vmul.f32 %v771_v0, %v755_v63  ;;  %v739_v3 = vld [vmem:[%s1373_s21 + $0x60] sm:$0xff]  ;;  %v786_v7 = vmul.f32 %v770_v5, %v754_v4  ;;  %v738_v8 = vld [vmem:[%s1373_s21 + $0x58] sm:$0xff]  ;;  %v785_v12 = vmul.f32 %v769_v10, %v753_v9  ;;  %v737_v13 = vld [vmem:[%s1373_s21 + $0x50] sm:$0xff] }
  0x7a   : > { %v752_v14 = vld [vmem:[%s1375_s22 + $0x48] sm:$0xff]  ;;  %v751_v19 = vld [vmem:[%s1375_s22 + $0x40] sm:$0xff]  ;;  %v750_v24 = vld [vmem:[%s1375_s22 + $0x38] sm:$0xff] }
  0x7b   : > { %809 = vmatpush.xpose.msra.mxu0 %v806_v59  ;;  %v803_v6 = vadd.f32 %v787_v2, %v739_v3  ;;  %v802_v11 = vadd.f32 %v786_v7, %v738_v8  ;;  %v768_v15 = vld [vmem:[%s1377_s23 + $0x48] sm:$0xff]  ;;  %v801_v16 = vadd.f32 %v785_v12, %v737_v13  ;;  %v767_v20 = vld [vmem:[%s1377_s23 + $0x40] sm:$0xff]  ;;  %v766_v25 = vld [vmem:[%s1377_s23 + $0x38] sm:$0xff] }
  0x7c   : > { %v784_v17 = vmul.f32 %v768_v15, %v752_v14  ;;  %v736_v18 = vld [vmem:[%s1373_s21 + $0x48] sm:$0xff]  ;;  %v783_v22 = vmul.f32 %v767_v20, %v751_v19  ;;  %v735_v23 = vld [vmem:[%s1373_s21 + $0x40] sm:$0xff]  ;;  %v782_v27 = vmul.f32 %v766_v25, %v750_v24  ;;  %v734_v28 = vld [vmem:[%s1373_s21 + $0x38] sm:$0xff] }
  0x7d   : > { %v749_v29 = vld [vmem:[%s1375_s22 + $0x30] sm:$0xff]  ;;  %v748_v34 = vld [vmem:[%s1375_s22 + $0x28] sm:$0xff]  ;;  %v747_v39 = vld [vmem:[%s1375_s22 + $0x20] sm:$0xff] }
  0x7e   : > { %v800_v21 = vadd.f32 %v784_v17, %v736_v18  ;;  %v799_v26 = vadd.f32 %v783_v22, %v735_v23  ;;  %v765_v30 = vld [vmem:[%s1377_s23 + $0x30] sm:$0xff]  ;;  %v798_v31 = vadd.f32 %v782_v27, %v734_v28  ;;  %v764_v35 = vld [vmem:[%s1377_s23 + $0x28] sm:$0xff]  ;;  %v763_v40 = vld [vmem:[%s1377_s23 + $0x20] sm:$0xff] }
  0x7f   : > { %810 = vmatpush.xpose.msra.mxu0 %v805_v60  ;;  %v781_v32 = vmul.f32 %v765_v30, %v749_v29  ;;  %v733_v33 = vld [vmem:[%s1373_s21 + $0x30] sm:$0xff]  ;;  %v780_v37 = vmul.f32 %v764_v35, %v748_v34  ;;  %v732_v38 = vld [vmem:[%s1373_s21 + $0x28] sm:$0xff]  ;;  %v779_v42 = vmul.f32 %v763_v40, %v747_v39  ;;  %v731_v43 = vld [vmem:[%s1373_s21 + $0x20] sm:$0xff] }
  0x80   : > { %v746_v44 = vld [vmem:[%s1375_s22 + $0x18] sm:$0xff]  ;;  %v745_v49 = vld [vmem:[%s1375_s22 + $0x10] sm:$0xff]  ;;  %v744_v54 = vld [vmem:[%s1375_s22 + $0x8] sm:$0xff] }
  0x81   : > { %v797_v36 = vadd.f32 %v781_v32, %v733_v33  ;;  %v796_v41 = vadd.f32 %v780_v37, %v732_v38  ;;  %v762_v45 = vld [vmem:[%s1377_s23 + $0x18] sm:$0xff]  ;;  %v795_v46 = vadd.f32 %v779_v42, %v731_v43  ;;  %v761_v50 = vld [vmem:[%s1377_s23 + $0x10] sm:$0xff]  ;;  %v760_v55 = vld [vmem:[%s1377_s23 + $0x8] sm:$0xff] }
  0x82   : > { %v778_v47 = vmul.f32 %v762_v45, %v746_v44  ;;  %v730_v48 = vld [vmem:[%s1373_s21 + $0x18] sm:$0xff]  ;;  %v777_v52 = vmul.f32 %v761_v50, %v745_v49  ;;  %v729_v53 = vld [vmem:[%s1373_s21 + $0x10] sm:$0xff]  ;;  %v776_v57 = vmul.f32 %v760_v55, %v744_v54  ;;  %v728_v58 = vld [vmem:[%s1373_s21 + $0x8] sm:$0xff] }
  0x83   : > { %811 = vmatpush.xpose.msra.mxu0 %v804_v1  ;;  %v743_v59 = vld [vmem:[%s1375_s22] sm:$0xff]  ;;  %v808_v1 = vld [vmem:[%s1353_s11] sm:$0xff] }
  0x84   : > { %v794_v51 = vadd.f32 %v778_v47, %v730_v48  ;;  %v793_v56 = vadd.f32 %v777_v52, %v729_v53  ;;  %v759_v60 = vld [vmem:[%s1377_s23] sm:$0xff]  ;;  %v792_v61 = vadd.f32 %v776_v57, %v728_v58  ;;  %v807_v2 = vld [vmem:[#allocation2] sm:$0xff] }
  0x85   : > { %v775_v62 = vmul.f32 %v759_v60, %v743_v59  ;;  %v727_v63 = vld [vmem:[%s1373_s21] sm:$0xff] }
  0x87   : > { %812 = vmatpush.xpose.msra.mxu0 %v803_v6  ;;  %v791_v0 = vadd.f32 %v775_v62, %v727_v63 }
  0x8b   : > { %813 = vmatpush.xpose.msra.mxu0 %v802_v11 }
  0x8f   : > { %814 = vmatpush.xpose.msra.mxu0 %v801_v16 }
  0x93   : > { %815 = vmatpush.xpose.msra.mxu0 %v800_v21 }
  0x97   : > { %816 = vmatpush.xpose.msra.mxu0 %v799_v26 }
  0x9b   : > { %817 = vmatpush.xpose.msra.mxu0 %v798_v31 }
  0x9f   : > { %818 = vmatpush.xpose.msra.mxu0 %v797_v36 }
  0xa3   : > { %819 = vmatpush.xpose.msra.mxu0 %v796_v41 }
  0xa7   : > { %820 = vmatpush.xpose.msra.mxu0 %v795_v46 }
  0xab   : > { %821 = vmatpush.xpose.msra.mxu0 %v794_v51 }
  0xaf   : > { %822 = vmatpush.xpose.msra.mxu0 %v793_v56 }
  0xb3   : > { %823 = vmatpush.xpose.msra.mxu0 %v792_v61 }
  0xb7   : > { %824 = vmatpush.xpose.msra.mxu0 %v791_v0 }
  0xba   : > { %825 = vmatmul.f32.vlgmr.msra.gmra.mxu0 %v808_v1 }
 0x136   : > { %834 = sbr.rel (%p1045_p13) target bundleno = 327 (0x147), region = 170 }
 0x137   : > { %v826_v3 = vpop.f32.mrf.mxu0 }
 0x138   : > { %v829_v4 = vadd.f32 %v826_v3, %v807_v2 }
 0x13a   : > { %830 = vst [vmem:[#allocation2] sm:$0xff] %v829_v4 }
 0x13b   : > { %v835_v5 = vld [vmem:[%s707_s24] sm:$0x1] }
 0x13c   : > { %v836_v6 = vld [vmem:[%s710_s17] sm:$0x1] }
 0x13d   : > { %v837_v7 = vld [vmem:[%s713_s1] sm:$0x1] }
 0x13e   : > { %v838_v8 = vmul.f32 %v837_v7, %v836_v6 }
 0x140   : > { %v839_v9 = vadd.f32 %v838_v8, %v835_v5 }
 0x141   : > { %v840_v10 = vld [vmem:[#allocation2] sm:$0xff] }
 0x142   : > { %v842_v11 = vperm.slane %v839_v9, 0 }
 0x144   : > { %v844_v12 = vadd.f32 %v842_v11, %v840_v10 }
 0x146   : > { %845 = vst [vmem:[%s1371_s9] sm:$0xff] %v844_v12 }
 0x147 PF: > { %s17_s30 = sadd.s32 1, %s1162_s30   ;;  %s1484_s14 = sld [smem:[#allocation6_spill]] }
 0x148   : > { %p14_p0 = scmp.ge.s32.totalorder %s17_s30, 8   ;;  %s1485_s24 = smov %s1142_s25 }
 0x149   : > { %s1486_s25 = smov %s1260_s15  ;;  %s1487_s26 = smov %s1154_s28 }
 0x14a   : > { %s1488_s27 = smov %s1158_s29  ;;  %s1489_s28 = smov %s1492_s8 }
 0x14b   :  { %16 = sbr.rel (!%p14_p0) target bundleno = 8 (0x8), region = 233 }
 0x14d   : > { %s1490_s29 = smov %s1484_s14 }

</bundles_post_ra>
